<compile_context>
chip_gen: v6e
topology: v6e:2x2x1
jax: 0.10.0
libtpu: 0.0.40
codegen_flags: <defaults>
</compile_context>

<pallas_src>
import jax
import jax.numpy as jnp
import numpy as np
from jax.experimental import pallas as pl
from jax.experimental.pallas import tpu as pltpu


def _aggregator_kernel(x_ref, w_ref, b_ref, o_ref, acc_ref):
    # x_ref  : (ts_blk, Rblk, C)  f32  chunk of source positions (leading axis)
    # w_ref  : (C, F)             gemm dtype (f32 or bf16)
    # b_ref  : (1, F)             f32
    # o_ref  : (Rblk, F)          same block across the Ts grid axis (resident)
    # acc_ref: (Rblk, C)          f32 running-max scratch
    ts = pl.program_id(1)

    @pl.when(ts == 0)
    def _():
        acc_ref[...] = jnp.full_like(acc_ref, -jnp.inf)

    # Running elementwise max over the leading (looped) Ts axis: VPU only.
    acc_ref[...] = jnp.maximum(acc_ref[...], jnp.max(x_ref[...], axis=0))

    @pl.when(ts == pl.num_programs(1) - 1)
    def _():
        pooled = acc_ref[...].astype(w_ref.dtype)            # (Rblk, C), no transpose
        y = jnp.dot(pooled, w_ref[...],
                    preferred_element_type=jnp.float32)      # MXU, f32 accumulation
        o_ref[...] = (y + b_ref[...]).astype(o_ref.dtype)


def _largest_divisor_leq(total, cap, align=1):
    """Largest d <= cap with total % d == 0 and d % align == 0; else total."""
    if total <= cap:
        return total
    best = None
    for d in range(align, cap + 1, align):
        if total % d == 0:
            best = d
    return best if best is not None else total


def aggregator_forward(x, src_lengths, w_t, bias, *, gemm_dtype=jnp.float32,
                       row_block_target=512, ts_chunk_budget_bytes=4 << 20):
    """x: (B, C, Tt, Ts) f32; w_t: (C, F) = nn.Linear.weight.T; bias: (F,).
    Returns (B, Tt, F)."""
    del src_lengths  # max_code does not use src_lengths
    B, C, Tt, Ts = x.shape
    F = w_t.shape[1]
    R = B * Tt

    # One wrapper-side XLA transpose: (B, C, Tt, Ts) -> (Ts, B*Tt, C).
    x_r = jnp.transpose(x, (3, 0, 2, 1)).reshape(Ts, R, C)

    # Row block: M of the GEMM; aim high for MXU fill, multiple of 8 sublanes.
    r_blk = _largest_divisor_leq(R, row_block_target, align=8)
    # Ts chunk: keep the per-step input tile (double-buffered by Pallas) small
    # enough for the tightest scoped-VMEM generation.
    slice_bytes = r_blk * C * x.dtype.itemsize
    ts_cap = max(1, min(Ts, ts_chunk_budget_bytes // max(slice_bytes, 1)))
    ts_blk = _largest_divisor_leq(Ts, ts_cap, align=1)

    w_g = w_t.astype(gemm_dtype)                 # set bf16 on v6e/v7x at scale
    b2 = bias.reshape(1, F).astype(jnp.float32)

    out_flat = pl.pallas_call(
        _aggregator_kernel,
        out_shape=jax.ShapeDtypeStruct((R, F), x.dtype),
        grid_spec=pltpu.PrefetchScalarGridSpec(
            num_scalar_prefetch=0,
            grid=(R // r_blk, Ts // ts_blk),      # reduction (Ts) axis last
            in_specs=[
                pl.BlockSpec((ts_blk, r_blk, C), lambda r, t: (t, r, 0)),
                pl.BlockSpec((C, F), lambda r, t: (0, 0)),
                pl.BlockSpec((1, F), lambda r, t: (0, 0)),
            ],
            out_specs=pl.BlockSpec((r_blk, F), lambda r, t: (r, 0)),
            scratch_shapes=[pltpu.VMEM((r_blk, C), jnp.float32)],
        ),
        compiler_params=pltpu.CompilerParams(
            dimension_semantics=("parallel", "arbitrary")),
    )(x_r, w_g, b2)

    return out_flat.reshape(B, Tt, F)


if __name__ == "__main__":
    # Small shapes consistent with the module:
    #   input_channels C=32, force_output_channels F=16 (F < C as asserted),
    #   batch B=2, target length Tt=8, source length Ts=16.
    B, C, Tt, Ts, F = 2, 32, 8, 16, 16

    key = jax.random.PRNGKey(0)
    kx, kw, kb = jax.random.split(key, 3)

    x = jax.random.normal(kx, (B, C, Tt, Ts), dtype=jnp.float32)
    src_lengths = jnp.full((B,), Ts, dtype=jnp.int32)

    # nn.Linear(C, F): weight (F, C), bias (F,) — deterministic init.
    w = jax.random.normal(kw, (F, C), dtype=jnp.float32) * (1.0 / np.sqrt(C))
    bias = jax.random.normal(kb, (F,), dtype=jnp.float32) * 0.01
    w_t = w.T  # (C, F)

    out = aggregator_forward(x, src_lengths, w_t, bias)
    out = jax.block_until_ready(out)

    # Pure-JAX reference for sanity.
    ref = jnp.einsum("btc,cf->btf",
                     jnp.transpose(jnp.max(x, axis=3), (0, 2, 1)), w_t) + bias
    assert out.shape == (B, Tt, F)
    np.testing.assert_allclose(np.asarray(out), np.asarray(ref),
                               rtol=1e-5, atol=1e-5)

    print("KERNEL_OK")
</pallas_src>

<mosaic_0001>
module attributes {stable_mosaic.version = 11 : i64} {
  func.func @_aggregator_kernel(%arg0: i32, %arg1: i32, %arg2: memref<16x16x32xf32, #tpu.memory_space<vmem>>, %arg3: memref<32x16xf32, #tpu.memory_space<vmem>>, %arg4: memref<1x16xf32, #tpu.memory_space<vmem>>, %arg5: memref<16x16xf32, #tpu.memory_space<vmem>>, %arg6: memref<16x32xf32, #tpu.memory_space<vmem>>) attributes {dimension_semantics = [#tpu.dimension_semantics<parallel>, #tpu.dimension_semantics<arbitrary>], iteration_bounds = array<i64: 1, 1>, scalar_prefetch = 0 : i64, scratch_operands = 1 : i64, tpu.core_type = #tpu.core_type<tc>, window_params = [{transform_indices = @transform_0, window_bounds = array<i64: 16, 16, 32>}, {pipeline_mode = #tpu.pipeline_mode<synchronous>, transform_indices = @transform_1, window_bounds = array<i64: 32, 16>}, {pipeline_mode = #tpu.pipeline_mode<synchronous>, transform_indices = @transform_2, window_bounds = array<i64: 1, 16>}, {transform_indices = @transform_3, window_bounds = array<i64: 16, 16>}]} {
    %c0_i32 = arith.constant 0 : i32
    %0 = arith.cmpi eq, %arg1, %c0_i32 : i32
    %1 = arith.extui %0 : i1 to i32
    %c0_i32_0 = arith.constant 0 : i32
    %2 = arith.cmpi ne, %1, %c0_i32_0 : i32
    scf.if %2 {
      %cst_9 = arith.constant 0xFF800000 : f32
      %11 = vector.broadcast %cst_9 : f32 to vector<16x32xf32>
      %c0_10 = arith.constant 0 : index
      %c0_11 = arith.constant 0 : index
      %12 = vector.load %arg6[%c0_10, %c0_11] : memref<16x32xf32, #tpu.memory_space<vmem>>, vector<16x32xf32>
      tpu.vector_store %arg6[%c0_10, %c0_11], %11 {strides = array<i32>} : memref<16x32xf32, #tpu.memory_space<vmem>>, vector<16x32xf32>,
    } else {
    }
    %c0 = arith.constant 0 : index
    %c0_1 = arith.constant 0 : index
    %3 = vector.load %arg6[%c0, %c0_1] : memref<16x32xf32, #tpu.memory_space<vmem>>, vector<16x32xf32>
    %c0_2 = arith.constant 0 : index
    %c0_3 = arith.constant 0 : index
    %c0_4 = arith.constant 0 : index
    %4 = vector.load %arg2[%c0_2, %c0_3, %c0_4] : memref<16x16x32xf32, #tpu.memory_space<vmem>>, vector<16x16x32xf32>
    %cst = arith.constant dense<0xFF800000> : vector<16x32xf32>
    %5 = vector.multi_reduction <maximumf>, %4, %cst [0] : vector<16x16x32xf32> to vector<16x32xf32>
    %6 = arith.maximumf %3, %5 : vector<16x32xf32>
    %c0_5 = arith.constant 0 : index
    %c0_6 = arith.constant 0 : index
    %7 = vector.load %arg6[%c0_5, %c0_6] : memref<16x32xf32, #tpu.memory_space<vmem>>, vector<16x32xf32>
    tpu.vector_store %arg6[%c0_5, %c0_6], %6 {strides = array<i32>} : memref<16x32xf32, #tpu.memory_space<vmem>>, vector<16x32xf32>,
    %c0_i32_7 = arith.constant 0 : i32
    %8 = arith.cmpi eq, %arg1, %c0_i32_7 : i32
    %9 = arith.extui %8 : i1 to i32
    %c0_i32_8 = arith.constant 0 : i32
    %10 = arith.cmpi ne, %9, %c0_i32_8 : i32
    scf.if %10 {
      %c0_9 = arith.constant 0 : index
      %c0_10 = arith.constant 0 : index
      %11 = vector.load %arg6[%c0_9, %c0_10] : memref<16x32xf32, #tpu.memory_space<vmem>>, vector<16x32xf32>
      %c0_11 = arith.constant 0 : index
      %c0_12 = arith.constant 0 : index
      %12 = vector.load %arg3[%c0_11, %c0_12] : memref<32x16xf32, #tpu.memory_space<vmem>>, vector<32x16xf32>
      %cst_13 = arith.constant dense<0.000000e+00> : vector<16x16xf32>
      %13 = tpu.matmul %11, %12, %cst_13 {dimension_numbers = #tpu.dot_dimension_numbers<[1], [0], [0], [1], [0, 0, 1, 1], [], []>} : vector<16x32xf32>, vector<32x16xf32>, vector<16x16xf32> -> vector<16x16xf32>
      %c0_14 = arith.constant 0 : index
      %c0_15 = arith.constant 0 : index
      %14 = vector.load %arg4[%c0_14, %c0_15] : memref<1x16xf32, #tpu.memory_space<vmem>>, vector<1x16xf32>
      %15 = vector.broadcast %14 : vector<1x16xf32> to vector<16x16xf32>
      %16 = arith.addf %13, %15 : vector<16x16xf32>
      %c0_16 = arith.constant 0 : index
      %c0_17 = arith.constant 0 : index
      %17 = vector.load %arg5[%c0_16, %c0_17] : memref<16x16xf32, #tpu.memory_space<vmem>>, vector<16x16xf32>
      tpu.vector_store %arg5[%c0_16, %c0_17], %16 {strides = array<i32>} : memref<16x16xf32, #tpu.memory_space<vmem>>, vector<16x16xf32>,
    } else {
    }
    return
  }
  func.func @transform_0(%arg0: i32, %arg1: i32) -> (i32, i32, i32) {
    %c0_i32 = arith.constant 0 : i32
    %c0_i32_0 = arith.constant 0 : i32
    return %arg1, %arg0, %c0_i32 : i32, i32, i32
  }
  func.func @transform_1(%arg0: i32, %arg1: i32) -> (i32, i32) {
    %c0_i32 = arith.constant 0 : i32
    %c0_i32_0 = arith.constant 0 : i32
    %c0_i32_1 = arith.constant 0 : i32
    return %c0_i32, %c0_i32_0 : i32, i32
  }
  func.func @transform_2(%arg0: i32, %arg1: i32) -> (i32, i32) {
    %c0_i32 = arith.constant 0 : i32
    %c0_i32_0 = arith.constant 0 : i32
    %c0_i32_1 = arith.constant 0 : i32
    return %c0_i32, %c0_i32_0 : i32, i32
  }
  func.func @transform_3(%arg0: i32, %arg1: i32) -> (i32, i32) {
    %c0_i32 = arith.constant 0 : i32
    %c0_i32_0 = arith.constant 0 : i32
    return %arg0, %c0_i32 : i32, i32
  }
}

</mosaic_0001>

<bundles_post_ra>
// kernel: tpu_custom_call.1
= control target key start
LH: loop header
LB: loop body
LE: loop exit
PB: predicated region body
PF: predicated region fallthrough
CT: control target
= control target key end

     0   :  { %8 = vsyncpa [#allocation4], 0  ;;  %s413_s0 = inlined_call_operand.hbm [shape: f32[16,16,32], index: 0, kind: input, shape index: {}]   ;;  %s414_s1 = inlined_call_operand.vmem [shape: f32[32,16], index: 1, kind: input, shape index: {}]   ;;  %s415_s2 = inlined_call_operand.vmem [shape: f32[1,16], index: 2, kind: input, shape index: {}]   ;;  %s416_s3 = inlined_call_operand.hbm [shape: f32[16,16], index: 3, kind: output, shape index: {}]  }
   0x1   :  { %9 = vsyncpa [#allocation5], 0  ;;  %s323_s12 = smov [#allocation3]  }
   0x2   :  { %s15_s13 = sshll.u32 %s323_s12, 4  ;;  %s16_s13 = int_to_ptr.vmem [resolvable:$true] %s15_s13 }
   0x3   :  { %s287_s14 = scalar_lea.vmem %s16_s13, 4096  ;;  %p292_p1 = scmp.lt.s32.totalorder %s16_s13, %s16_s13 }
   0x4   :  { %p288_p0 = scmp.ne.s32.totalorder %s16_s13, %s287_s14  ;;  %p293_p2 = scmp.lt.s32.totalorder %s287_s14, %s287_s14 }
   0x6   :  { %p294_p3 = por %p293_p2, %p292_p1 }
   0x8   :  { %p295_p4 = pnand %p294_p3, %p288_p0 }
   0xa   :  { %298 = shalt.err (!%p295_p4)
}
   0xb   :  { %s324_s15 = smov 128   ;;  %s325_s16 = smov 8  }
   0xc   :  { %21 = dma.hbm_to_vmem [thread:$0]  %s413_s0, 4096, %s16_s13, [#allocation4], %s324_s15, %s324_s15, %s325_s16  }
   0xd   :  { %319 = dma.done.wait [#allocation4], 4096  }
   0xe   :  { %320 = vsyncadd [#allocation4], 4294963200  ;;  %vm33_vm0 = vcmask 261120   ;;  %v326_v0 = vmov -inf   ;;  %v145_v1 = vld [vmem:[%s414_s1 + $0x18] sm:$0xff]  ;;  %v144_v2 = vld [vmem:[%s414_s1 + $0x10] sm:$0xff] }
   0xf   :  { %34 = vst.msk [vmem:[#allocation2] sm:$0xff] %vm33_vm0, %v326_v0  ;;  %35 = vst.msk [vmem:[#allocation2 + $0x8] sm:$0xff] %vm33_vm0, %v326_v0  ;;  %263 = vmatprep.subr.mxu0 %v145_v1  ;;  %v143_v3 = vld [vmem:[%s414_s1 + $0x8] sm:$0xff]  ;;  %v38_v4 = vld [vmem:[#allocation3] sm:$0xff]  ;;  %vm234_vm1 = vcmask 130048   ;;  %s327_s27 = smov [#allocation6]  }
  0x10   :  { %264 = vmatpush3.msra.mxu0 %v145_v1  ;;  %v142_v5 = vld [vmem:[%s414_s1] sm:$0xff]  ;;  %v42_v7 = vld [vmem:[#allocation3 + $0x20] sm:$0xff]  ;;  %v71_v9 = vsel %vm33_vm0, %v38_v4, -inf  ;;  %v39_v37 = vld [vmem:[#allocation3 + $0x8] sm:$0xff]  ;;  %s242_s28 = sshll.u32 %s327_s27, 4  ;;  %s243_s28 = int_to_ptr.vmem [resolvable:$true] %s242_s28 }
  0x11   :  { %v40_v6 = vld [vmem:[#allocation3 + $0x10] sm:$0xff]  ;;  %265 = vmatprep.subr.mxu0 %v144_v2  ;;  %v46_v10 = vld [vmem:[#allocation3 + $0x40] sm:$0xff]  ;;  %v73_v14 = vsel %vm33_vm0, %v42_v7, -inf  ;;  %v41_v42 = vld [vmem:[#allocation3 + $0x18] sm:$0xff]  ;;  %v102_v45 = vsel %vm33_vm0, %v39_v37, -inf  ;;  %s299_s29 = scalar_lea.vmem %s243_s28, 256  ;;  %p304_p6 = scmp.lt.s32.totalorder %s243_s28, %s243_s28 }
  0x12   :  { %v44_v8 = vld [vmem:[#allocation3 + $0x30] sm:$0xff]  ;;  %v50_v12 = vld [vmem:[#allocation3 + $0x60] sm:$0xff]  ;;  %v72_v13 = vsel %vm33_vm0, %v40_v6, -inf  ;;  %266 = vmatpush3.msra.mxu0 %v144_v2  ;;  %v74_v19 = vmax.f32 %v71_v9, %v73_v14  ;;  %v77_v21 = vsel %vm33_vm0, %v46_v10, -inf  ;;  %v43_v43 = vld [vmem:[#allocation3 + $0x28] sm:$0xff]  ;;  %v103_v49 = vsel %vm33_vm0, %v41_v42, -inf  ;;  %p300_p5 = scmp.ne.s32.totalorder %s243_s28, %s299_s29  ;;  %p305_p7 = scmp.lt.s32.totalorder %s299_s29, %s299_s29 }
  0x13   :  { %v48_v11 = vld [vmem:[#allocation3 + $0x50] sm:$0xff]  ;;  %v75_v15 = vsel %vm33_vm0, %v44_v8, -inf  ;;  %v54_v17 = vld [vmem:[#allocation3 + $0x80] sm:$0xff]  ;;  %267 = vmatprep.subr.mxu0 %v143_v3  ;;  %v81_v26 = vsel %vm33_vm0, %v50_v12, -inf  ;;  %v45_v44 = vld [vmem:[#allocation3 + $0x38] sm:$0xff]  ;;  %v104_v50 = vsel %vm33_vm0, %v43_v43, -inf }
  0x14   :  { %v52_v16 = vld [vmem:[#allocation3 + $0x70] sm:$0xff]  ;;  %v76_v20 = vmax.f32 %v72_v13, %v75_v15  ;;  %v79_v22 = vsel %vm33_vm0, %v48_v11, -inf  ;;  %v58_v23 = vld [vmem:[#allocation3 + $0xa0] sm:$0xff]  ;;  %268 = vmatpush3.msra.mxu0 %v143_v3  ;;  %v78_v29 = vmax.f32 %v74_v19, %v77_v21  ;;  %v85_v31 = vsel %vm33_vm0, %v54_v17, -inf  ;;  %v47_v46 = vld [vmem:[#allocation3 + $0x48] sm:$0xff]  ;;  %p306_p8 = por %p305_p7, %p304_p6 }
  0x15   :  { %v56_v18 = vld [vmem:[#allocation3 + $0x90] sm:$0xff]  ;;  %v62_v25 = vld [vmem:[#allocation3 + $0xc0] sm:$0xff]  ;;  %v83_v27 = vsel %vm33_vm0, %v52_v16, -inf  ;;  %269 = vmatprep.subr.mxu0 %v142_v5  ;;  %v89_v34 = vsel %vm33_vm0, %v58_v23, -inf  ;;  %v49_v47 = vld [vmem:[#allocation3 + $0x58] sm:$0xff]  ;;  %v106_v51 = vsel %vm33_vm0, %v45_v44, -inf  ;;  %v105_v57 = vmax.f32 %v102_v45, %v104_v50 }
  0x16   :  { %v60_v24 = vld [vmem:[#allocation3 + $0xb0] sm:$0xff]  ;;  %v80_v30 = vmax.f32 %v76_v20, %v79_v22  ;;  %v66_v32 = vld [vmem:[#allocation3 + $0xe0] sm:$0xff]  ;;  %v87_v33 = vsel %vm33_vm0, %v56_v18, -inf  ;;  %v93_v36 = vsel %vm33_vm0, %v62_v25, -inf  ;;  %270 = vmatpush3.msra.mxu0 %v142_v5  ;;  %v82_v39 = vmax.f32 %v78_v29, %v81_v26  ;;  %v51_v48 = vld [vmem:[#allocation3 + $0x68] sm:$0xff]  ;;  %p307_p9 = pnand %p306_p8, %p300_p5 }
  0x17   :  { %v64_v28 = vld [vmem:[#allocation3 + $0xd0] sm:$0xff]  ;;  %v91_v35 = vsel %vm33_vm0, %v60_v24, -inf  ;;  %v53_v54 = vld [vmem:[#allocation3 + $0x78] sm:$0xff]  ;;  %v55_v55 = vld [vmem:[#allocation3 + $0x88] sm:$0xff]  ;;  %v107_v58 = vmax.f32 %v103_v49, %v106_v51  ;;  %v97_v59 = vsel %vm33_vm0, %v66_v32, -inf  ;;  %v108_v60 = vsel %vm33_vm0, %v47_v46, -inf }
  0x18   :  { %v68_v38 = vld [vmem:[#allocation3 + $0xf0] sm:$0xff]  ;;  %v84_v40 = vmax.f32 %v80_v30, %v83_v27  ;;  %v95_v41 = vsel %vm33_vm0, %v64_v28, -inf  ;;  %v86_v52 = vmax.f32 %v82_v39, %v85_v31  ;;  %v57_v56 = vld [vmem:[#allocation3 + $0x98] sm:$0xff]  ;;  %v110_v61 = vsel %vm33_vm0, %v49_v47, -inf  ;;  %v59_v1 = vld [vmem:[#allocation3 + $0xa8] sm:$0xff] }
  0x19   :  { %v112_v62 = vsel %vm33_vm0, %v51_v48, -inf  ;;  %v61_v2 = vld [vmem:[#allocation3 + $0xb8] sm:$0xff]  ;;  %v109_v3 = vmax.f32 %v105_v57, %v108_v60  ;;  %v111_v4 = vmax.f32 %v107_v58, %v110_v61  ;;  %v99_v5 = vsel %vm33_vm0, %v68_v38, -inf  ;;  %v63_v11 = vld [vmem:[#allocation3 + $0xc8] sm:$0xff]  ;;  %v36_v23 = vld [vmem:[#allocation2] sm:$0xff] }
  0x1a   :  { %v88_v53 = vmax.f32 %v84_v40, %v87_v33  ;;  %v90_v63 = vmax.f32 %v86_v52, %v89_v34  ;;  %v114_v6 = vsel %vm33_vm0, %v53_v54, -inf  ;;  %v116_v7 = vsel %vm33_vm0, %v55_v55, -inf  ;;  %v65_v12 = vld [vmem:[#allocation3 + $0xd8] sm:$0xff]  ;;  %v67_v19 = vld [vmem:[#allocation3 + $0xe8] sm:$0xff] }
  0x1b   :  { %v118_v8 = vsel %vm33_vm0, %v57_v56, -inf  ;;  %v113_v13 = vmax.f32 %v109_v3, %v112_v62  ;;  %v115_v14 = vmax.f32 %v111_v4, %v114_v6  ;;  %v120_v15 = vsel %vm33_vm0, %v59_v1, -inf  ;;  %v69_v20 = vld [vmem:[#allocation3 + $0xf8] sm:$0xff] }
  0x1c   :  { %v92_v0 = vmax.f32 %v88_v53, %v91_v35  ;;  %v94_v9 = vmax.f32 %v90_v63, %v93_v36  ;;  %v122_v16 = vsel %vm33_vm0, %v61_v2, -inf  ;;  %v124_v24 = vsel %vm33_vm0, %v63_v11, -inf  ;;  %v37_v36 = vld [vmem:[#allocation2 + $0x8] sm:$0xff] }
  0x1d   :  { %v117_v21 = vmax.f32 %v113_v13, %v116_v7  ;;  %v119_v22 = vmax.f32 %v115_v14, %v118_v8  ;;  %v126_v25 = vsel %vm33_vm0, %v65_v12, -inf  ;;  %v128_v29 = vsel %vm33_vm0, %v67_v19, -inf }
  0x1e   :  { %v96_v10 = vmax.f32 %v92_v0, %v95_v41  ;;  %v98_v17 = vmax.f32 %v94_v9, %v97_v59  ;;  %v130_v30 = vsel %vm33_vm0, %v69_v20, -inf  ;;  %v254_v41 = vld [vmem:[%s415_s2] ss:$0 sm:$0xff] }
  0x1f   :  { %v121_v27 = vmax.f32 %v117_v21, %v120_v15  ;;  %v123_v28 = vmax.f32 %v119_v22, %v122_v16 }
  0x20   :  { %v100_v18 = vmax.f32 %v96_v10, %v99_v5 }
  0x21   :  { %v125_v32 = vmax.f32 %v121_v27, %v124_v24  ;;  %v127_v33 = vmax.f32 %v123_v28, %v126_v25 }
  0x22   :  { %v101_v26 = vmax.f32 %v98_v17, %v100_v18 }
  0x23   :  { %v129_v34 = vmax.f32 %v125_v32, %v128_v29  ;;  %v131_v35 = vmax.f32 %v127_v33, %v130_v30 }
  0x24   :  { %v133_v31 = vmax.f32 %v36_v23, %v101_v26 }
  0x25   :  { %v132_v37 = vmax.f32 %v129_v34, %v131_v35 }
  0x26   :  { %135 = vst.msk [vmem:[#allocation2] sm:$0xff] %vm33_vm0, %v133_v31 }
  0x27   :  { %v134_v38 = vmax.f32 %v37_v36, %v132_v37 }
  0x29   :  { %136 = vst.msk [vmem:[#allocation2 + $0x8] sm:$0xff] %vm33_vm0, %v134_v38 }
  0x2d   :  { %v140_v39 = vld [vmem:[#allocation2] sm:$0xff] }
  0x2e   :  { %271 = vmatprep.mubr.msk.f32.mxu0 %vm33_vm0, %v140_v39 }
  0x30   :  { %v141_v40 = vld [vmem:[#allocation2 + $0x8] sm:$0xff] }
  0x31   :  { %272 = vmatmul.mubr.msk.f32.vlgmr.msra.gmra.mxu0 %vm33_vm0, %v141_v40 }
  0xf1   :  { %v273_v42 = vpop.f32.mrf.mxu0 }
  0xf2   :  { %v231_v43 = vadd.f32 %v273_v42, %v254_v41 }
  0xf3   :  { %v225_v44 = vpop.f32.mrf.mxu0 }
  0xf4   :  { %v226_v45 = vadd.f32 %v254_v41, %v225_v44  ;;  %236 = vst.msk [vmem:[#allocation6 + $0x8] sm:$0xff] %vm234_vm1, %v231_v43 }
  0xf6   :  { %235 = vst.msk [vmem:[#allocation6] sm:$0xff] %vm234_vm1, %v226_v45 }
  0xf7   :  { %310 = shalt.err (!%p307_p9)
}
  0xf8   :  { %248 = dma.vmem_to_hbm [thread:$0]  %s243_s28, 256, %s416_s3, [#allocation5], %s324_s15, %s324_s15, %s325_s16  }
  0xf9   :  { %321 = dma.done.wait [#allocation5], 256  }
  0xfa   :  { %322 = vsyncadd [#allocation5], 4294967040 }
  0xfb   :  { %252 = vsyncpa [#allocation4], 1 }
  0xfc   :  { %253 = vsyncpa [#allocation5], 1 }

</bundles_post_ra>
